<compile_context>
chip_gen: v5e
topology: v5e:2x2
jax: 0.10.0
libtpu: 0.0.40
codegen_flags: <defaults>
</compile_context>

<pallas_src>
import math

import jax
import jax.numpy as jnp
import numpy as np
from jax import lax
from jax.experimental import pallas as pl
from jax.experimental.pallas import tpu as pltpu

# Problem sizes (small, consistent with the module).
B = 2          # batch
S = 8          # sequence length
D = 32         # hidden_dim (d_model)
H = 4          # num_head
DK = D // H    # per-head dim
EPS = 1e-6

# dot_general dimension numbers:
_BMM = (((2,), (1,)), ((0,), (0,)))   # batched matmul: lhs[-1] x rhs[1], batch axis 0
_QKT = (((2,), (2,)), ((0,), (0,)))   # Q @ K^T per head (contract last dims)


def _layernorm(x, gamma, beta):
    # PyTorch LayerNorm: biased variance over last axis, eps inside sqrt.
    mu = jnp.mean(x, axis=-1, keepdims=True)
    var = jnp.mean((x - mu) ** 2, axis=-1, keepdims=True)
    return (x - mu) * lax.rsqrt(var + EPS) * gamma + beta


def sakt_kernel(x_ref, wqkv_ref, bias_ref, wo_ref, ffn_ref, vec_ref, out_ref):
    # x_ref   : (3H, BS, D)  rows [0:H) replicate q2d, rows [H:3H) replicate k2d
    # wqkv_ref: (3H, D, DK)  per-head Wq/Wk/Wv (pre-transposed, pre-split)
    # bias_ref: (BS, BS)     additive mask bias (0 or -1e9); cross-batch = -1e9
    # wo_ref  : (H, DK, D)   per-head row blocks of the output projection
    # ffn_ref : (2, D, D)    [w1^T, w2^T]
    # vec_ref : (8, D)       rows: b1, b2, ln0_g, ln0_b, ln1_g, ln1_b, pad, pad
    k2d = x_ref[H]                                               # (BS, D)

    # Fused per-head Q/K/V projections: one batched MXU call.
    qkv = lax.dot_general(x_ref[...], wqkv_ref[...], _BMM,
                          preferred_element_type=jnp.float32)    # (3H, BS, DK)
    q_h = qkv[0:H]                                               # (H, BS, DK)
    k_h = qkv[H:2 * H]
    v_h = qkv[2 * H:3 * H]

    # Scaled dot-product attention, all heads & batch elements at once.
    # Cross-batch score entries are removed by the additive bias.
    scores = lax.dot_general(q_h, k_h, _QKT,
                             preferred_element_type=jnp.float32)  # (H, BS, BS)
    scores = scores * jnp.float32(1.0 / math.sqrt(DK)) + bias_ref[...]
    smax = jnp.max(scores, axis=-1, keepdims=True)
    p = jnp.exp(scores - smax)
    p = p * pl.reciprocal(jnp.sum(p, axis=-1, keepdims=True), approx=True)
    # attention dropout: identity in eval mode.
    ctx = lax.dot_general(p, v_h, _BMM,
                          preferred_element_type=jnp.float32)     # (H, BS, DK)

    # Output projection: per-head partial products summed over heads
    # (equivalent to concat(heads) @ Wo^T, without the lane-concat).
    attn = jnp.sum(lax.dot_general(ctx, wo_ref[...], _BMM,
                                   preferred_element_type=jnp.float32),
                   axis=0)                                        # (BS, D)

    vec = vec_ref[...]
    b1, b2 = vec[0:1], vec[1:2]
    g0, be0 = vec[2:3], vec[3:4]
    g1, be1 = vec[4:5], vec[5:6]

    # Residual 1 (w.r.t. `key`, per SAKT) + LayerNorm 0.
    x1 = _layernorm(k2d + attn, g0, be0)

    # Position-wise FFN (dropout identity in eval mode).
    h1 = jnp.maximum(
        jnp.dot(x1, ffn_ref[0], preferred_element_type=jnp.float32) + b1, 0.0)
    ffn = jnp.dot(h1, ffn_ref[1], preferred_element_type=jnp.float32) + b2

    # Residual 2 + LayerNorm 1.
    out_ref[...] = _layernorm(x1 + ffn, g1, be1)


def _pack_weights(params):
    (wq_t, wk_t, wv_t, wo_t, w1_t, b1, w2_t, b2, g0, be0, g1, be1) = params

    def per_head(w_t):                       # (D, D) -> (H, D, DK)
        return jnp.transpose(w_t.reshape(D, H, DK), (1, 0, 2))

    wqkv_h = jnp.concatenate(
        [per_head(wq_t), per_head(wk_t), per_head(wv_t)], axis=0)  # (3H, D, DK)
    wo_h = wo_t.reshape(H, DK, D)                                  # (H, DK, D)
    ffn_w = jnp.stack([w1_t, w2_t], axis=0)                        # (2, D, D)
    vec = jnp.zeros((8, D), jnp.float32)
    vec = (vec.at[0].set(b1[0]).at[1].set(b2[0])
              .at[2].set(g0[0]).at[3].set(be0[0])
              .at[4].set(g1[0]).at[5].set(be1[0]))
    return wqkv_h, wo_h, ffn_w, vec


def _mask_bias(mask):
    # Additive bias (0 for attend, -1e9 for masked). Cross-batch entries are
    # also -1e9 so the two batch elements can share one (BS, BS) score slab.
    neg = jnp.float32(-1.0e9)
    mb = jnp.where(mask == 0, neg, jnp.float32(0.0))               # (B, S, S)
    bias = jnp.full((B * S, B * S), neg, jnp.float32)
    for b in range(B):                                             # static, B=2
        bias = bias.at[b * S:(b + 1) * S, b * S:(b + 1) * S].set(mb[b])
    return bias


@jax.jit
def sakt_layer(query, key, mask, params):
    """query, key: (B, S, D) f32; mask: (B, S, S) int32."""
    wqkv_h, wo_h, ffn_w, vec = _pack_weights(params)
    q2d = query.reshape(B * S, D)
    k2d = key.reshape(B * S, D)
    # Replicate activations along the head-batch axis so all Q/K/V projections
    # become a single batched matmul (wrapper-side layout plumbing, ~24 KiB).
    x_all = jnp.concatenate(
        [jnp.broadcast_to(q2d[None], (H, B * S, D)),
         jnp.broadcast_to(k2d[None], (2 * H, B * S, D))], axis=0)  # (3H, BS, D)
    bias = _mask_bias(mask)

    vmem = pl.BlockSpec(memory_space=pltpu.MemorySpace.VMEM)
    out2d = pl.pallas_call(
        sakt_kernel,
        out_shape=jax.ShapeDtypeStruct((B * S, D), jnp.float32),
        in_specs=[vmem] * 6,
        out_specs=vmem,
    )(x_all, wqkv_h, bias, wo_h, ffn_w, vec)
    return out2d.reshape(B, S, D)


def sakt_reference(query, key, mask, params):
    """Pure-JAX reference mirroring the PyTorch forward (eval mode)."""
    (wq_t, wk_t, wv_t, wo_t, w1_t, b1, w2_t, b2,
     g0, be0, g1, be1) = params

    def ln(x, g, b):
        mu = jnp.mean(x, axis=-1, keepdims=True)
        var = jnp.mean((x - mu) ** 2, axis=-1, keepdims=True)
        return (x - mu) / jnp.sqrt(var + EPS) * g + b

    Q = query @ wq_t
    K = key @ wk_t
    V = key @ wv_t

    def split(x):  # (B,S,D) -> (B,H,S,DK)
        return x.reshape(B, S, H, DK).transpose(0, 2, 1, 3)

    Qh, Kh, Vh = split(Q), split(K), split(V)
    scores = jnp.einsum("bhqd,bhkd->bhqk", Qh, Kh) / math.sqrt(DK)
    scores = jnp.where(mask[:, None, :, :] == 0, -1.0e9, scores)
    p = jax.nn.softmax(scores, axis=-1)
    o = jnp.einsum("bhqk,bhkd->bhqd", p, Vh)
    o = o.transpose(0, 2, 1, 3).reshape(B, S, D) @ wo_t
    x1 = ln(key + o, g0[0], be0[0])
    ffn = jnp.maximum(x1 @ w1_t + b1[0], 0.0) @ w2_t + b2[0]
    return ln(x1 + ffn, g1[0], be1[0])


def make_params(rng):
    keys = jax.random.split(rng, 8)
    scale = 1.0 / math.sqrt(D)
    wq_t = jax.random.normal(keys[0], (D, D), jnp.float32) * scale
    wk_t = jax.random.normal(keys[1], (D, D), jnp.float32) * scale
    wv_t = jax.random.normal(keys[2], (D, D), jnp.float32) * scale
    wo_t = jax.random.normal(keys[3], (D, D), jnp.float32) * scale
    w1_t = jax.random.normal(keys[4], (D, D), jnp.float32) * scale
    b1 = jax.random.normal(keys[5], (1, D), jnp.float32) * 0.01
    w2_t = jax.random.normal(keys[6], (D, D), jnp.float32) * scale
    b2 = jax.random.normal(keys[7], (1, D), jnp.float32) * 0.01
    g0 = jnp.ones((1, D), jnp.float32)
    be0 = jnp.zeros((1, D), jnp.float32)
    g1 = jnp.ones((1, D), jnp.float32)
    be1 = jnp.zeros((1, D), jnp.float32)
    return (wq_t, wk_t, wv_t, wo_t, w1_t, b1, w2_t, b2, g0, be0, g1, be1)


if __name__ == "__main__":
    root = jax.random.PRNGKey(0)
    k_q, k_k, k_p = jax.random.split(root, 3)

    query = jax.random.normal(k_q, (B, S, D), jnp.float32)
    key = jax.random.normal(k_k, (B, S, D), jnp.float32)
    # Causal mask, same for every batch element (typical SAKT usage).
    mask = jnp.broadcast_to(
        jnp.tril(jnp.ones((S, S), jnp.int32)), (B, S, S))
    params = make_params(k_p)

    out = sakt_layer(query, key, mask, params)
    out = jax.block_until_ready(out)

    ref = sakt_reference(query, key, mask, params)
    np.testing.assert_allclose(np.asarray(out), np.asarray(ref),
                               rtol=1e-2, atol=1e-2)
    print("KERNEL_OK")
</pallas_src>

<mosaic_0001>
module attributes {stable_mosaic.version = 11 : i64} {
  func.func @sakt_kernel(%arg0: memref<12x16x32xf32, #tpu.memory_space<vmem>>, %arg1: memref<12x32x8xf32, #tpu.memory_space<vmem>>, %arg2: memref<16x16xf32, #tpu.memory_space<vmem>>, %arg3: memref<4x8x32xf32, #tpu.memory_space<vmem>>, %arg4: memref<2x32x32xf32, #tpu.memory_space<vmem>>, %arg5: memref<8x32xf32, #tpu.memory_space<vmem>>, %arg6: memref<16x32xf32, #tpu.memory_space<vmem>>) attributes {dimension_semantics = [], scalar_prefetch = 0 : i64, scratch_operands = 0 : i64, tpu.core_type = #tpu.core_type<tc>} {
    %c4 = arith.constant 4 : index
    %c0 = arith.constant 0 : index
    %c0_0 = arith.constant 0 : index
    %0 = vector.load %arg0[%c4, %c0, %c0_0] : memref<12x16x32xf32, #tpu.memory_space<vmem>>, vector<1x16x32xf32>
    %1 = vector.shape_cast %0 : vector<1x16x32xf32> to vector<16x32xf32>
    %c0_1 = arith.constant 0 : index
    %c0_2 = arith.constant 0 : index
    %c0_3 = arith.constant 0 : index
    %2 = vector.load %arg0[%c0_1, %c0_2, %c0_3] : memref<12x16x32xf32, #tpu.memory_space<vmem>>, vector<12x16x32xf32>
    %c0_4 = arith.constant 0 : index
    %c0_5 = arith.constant 0 : index
    %c0_6 = arith.constant 0 : index
    %3 = vector.load %arg1[%c0_4, %c0_5, %c0_6] : memref<12x32x8xf32, #tpu.memory_space<vmem>>, vector<12x32x8xf32>
    %cst = arith.constant dense<0.000000e+00> : vector<12x16x8xf32>
    %4 = tpu.matmul %2, %3, %cst {dimension_numbers = #tpu.dot_dimension_numbers<[2], [1], [1], [2], [0, 0, 0, 1, 1, 2], [0], [0]>} : vector<12x16x32xf32>, vector<12x32x8xf32>, vector<12x16x8xf32> -> vector<12x16x8xf32>
    %5 = vector.extract_strided_slice %4 {offsets = [0, 0, 0], sizes = [4, 16, 8], strides = [1, 1, 1]} : vector<12x16x8xf32> to vector<4x16x8xf32>
    %6 = vector.extract_strided_slice %4 {offsets = [4, 0, 0], sizes = [4, 16, 8], strides = [1, 1, 1]} : vector<12x16x8xf32> to vector<4x16x8xf32>
    %7 = vector.extract_strided_slice %4 {offsets = [8, 0, 0], sizes = [4, 16, 8], strides = [1, 1, 1]} : vector<12x16x8xf32> to vector<4x16x8xf32>
    %cst_7 = arith.constant dense<0.000000e+00> : vector<4x16x16xf32>
    %8 = tpu.matmul %5, %6, %cst_7 {dimension_numbers = #tpu.dot_dimension_numbers<[2], [2], [1], [1], [0, 0, 0, 1, 1, 1], [0], [0]>} : vector<4x16x8xf32>, vector<4x16x8xf32>, vector<4x16x16xf32> -> vector<4x16x16xf32>
    %cst_8 = arith.constant 0.353553385 : f32
    %9 = vector.broadcast %cst_8 : f32 to vector<4x16x16xf32>
    %10 = arith.mulf %8, %9 : vector<4x16x16xf32>
    %c0_9 = arith.constant 0 : index
    %c0_10 = arith.constant 0 : index
    %11 = vector.load %arg2[%c0_9, %c0_10] : memref<16x16xf32, #tpu.memory_space<vmem>>, vector<16x16xf32>
    %12 = vector.shape_cast %11 : vector<16x16xf32> to vector<1x16x16xf32>
    %13 = vector.broadcast %12 : vector<1x16x16xf32> to vector<4x16x16xf32>
    %14 = arith.addf %10, %13 : vector<4x16x16xf32>
    %cst_11 = arith.constant dense<0xFF800000> : vector<4x16xf32>
    %15 = vector.multi_reduction <maximumf>, %14, %cst_11 [2] : vector<4x16x16xf32> to vector<4x16xf32>
    %16 = vector.shape_cast %15 : vector<4x16xf32> to vector<4x16x1xf32>
    %17 = vector.broadcast %16 : vector<4x16x1xf32> to vector<4x16x16xf32>
    %18 = arith.subf %14, %17 : vector<4x16x16xf32>
    %19 = math.exp %18 : vector<4x16x16xf32>
    %cst_12 = arith.constant dense<0.000000e+00> : vector<4x16xf32>
    %20 = vector.multi_reduction <add>, %19, %cst_12 [2] : vector<4x16x16xf32> to vector<4x16xf32>
    %21 = vector.shape_cast %20 : vector<4x16xf32> to vector<4x16x1xf32>
    %22 = tpu.reciprocal %21 {approx = true} : vector<4x16x1xf32> -> vector<4x16x1xf32>
    %23 = vector.broadcast %22 : vector<4x16x1xf32> to vector<4x16x16xf32>
    %24 = arith.mulf %19, %23 : vector<4x16x16xf32>
    %cst_13 = arith.constant dense<0.000000e+00> : vector<4x16x8xf32>
    %25 = tpu.matmul %24, %7, %cst_13 {dimension_numbers = #tpu.dot_dimension_numbers<[2], [1], [1], [2], [0, 0, 0, 1, 1, 2], [0], [0]>} : vector<4x16x16xf32>, vector<4x16x8xf32>, vector<4x16x8xf32> -> vector<4x16x8xf32>
    %c0_14 = arith.constant 0 : index
    %c0_15 = arith.constant 0 : index
    %c0_16 = arith.constant 0 : index
    %26 = vector.load %arg3[%c0_14, %c0_15, %c0_16] : memref<4x8x32xf32, #tpu.memory_space<vmem>>, vector<4x8x32xf32>
    %cst_17 = arith.constant dense<0.000000e+00> : vector<4x16x32xf32>
    %27 = tpu.matmul %25, %26, %cst_17 {dimension_numbers = #tpu.dot_dimension_numbers<[2], [1], [1], [2], [0, 0, 0, 1, 1, 2], [0], [0]>} : vector<4x16x8xf32>, vector<4x8x32xf32>, vector<4x16x32xf32> -> vector<4x16x32xf32>
    %cst_18 = arith.constant dense<0.000000e+00> : vector<16x32xf32>
    %28 = vector.multi_reduction <add>, %27, %cst_18 [0] : vector<4x16x32xf32> to vector<16x32xf32>
    %c0_19 = arith.constant 0 : index
    %c0_20 = arith.constant 0 : index
    %29 = vector.load %arg5[%c0_19, %c0_20] : memref<8x32xf32, #tpu.memory_space<vmem>>, vector<8x32xf32>
    %30 = vector.extract_strided_slice %29 {offsets = [0, 0], sizes = [1, 32], strides = [1, 1]} : vector<8x32xf32> to vector<1x32xf32>
    %31 = vector.extract_strided_slice %29 {offsets = [1, 0], sizes = [1, 32], strides = [1, 1]} : vector<8x32xf32> to vector<1x32xf32>
    %32 = vector.extract_strided_slice %29 {offsets = [2, 0], sizes = [1, 32], strides = [1, 1]} : vector<8x32xf32> to vector<1x32xf32>
    %33 = vector.extract_strided_slice %29 {offsets = [3, 0], sizes = [1, 32], strides = [1, 1]} : vector<8x32xf32> to vector<1x32xf32>
    %34 = vector.extract_strided_slice %29 {offsets = [4, 0], sizes = [1, 32], strides = [1, 1]} : vector<8x32xf32> to vector<1x32xf32>
    %35 = vector.extract_strided_slice %29 {offsets = [5, 0], sizes = [1, 32], strides = [1, 1]} : vector<8x32xf32> to vector<1x32xf32>
    %36 = arith.addf %1, %28 : vector<16x32xf32>
    %cst_21 = arith.constant dense<0.000000e+00> : vector<16xf32>
    %37 = vector.multi_reduction <add>, %36, %cst_21 [1] : vector<16x32xf32> to vector<16xf32>
    %38 = vector.shape_cast %37 : vector<16xf32> to vector<16x1xf32>
    %cst_22 = arith.constant 3.200000e+01 : f32
    %39 = vector.broadcast %cst_22 : f32 to vector<16x1xf32>
    %40 = arith.divf %38, %39 : vector<16x1xf32>
    %41 = vector.broadcast %40 : vector<16x1xf32> to vector<16x32xf32>
    %42 = arith.subf %36, %41 : vector<16x32xf32>
    %43 = arith.mulf %42, %42 : vector<16x32xf32>
    %cst_23 = arith.constant dense<0.000000e+00> : vector<16xf32>
    %44 = vector.multi_reduction <add>, %43, %cst_23 [1] : vector<16x32xf32> to vector<16xf32>
    %45 = vector.shape_cast %44 : vector<16xf32> to vector<16x1xf32>
    %cst_24 = arith.constant 3.200000e+01 : f32
    %46 = vector.broadcast %cst_24 : f32 to vector<16x1xf32>
    %47 = arith.divf %45, %46 : vector<16x1xf32>
    %48 = vector.broadcast %40 : vector<16x1xf32> to vector<16x32xf32>
    %49 = arith.subf %36, %48 : vector<16x32xf32>
    %cst_25 = arith.constant 9.99999997E-7 : f32
    %50 = vector.broadcast %cst_25 : f32 to vector<16x1xf32>
    %51 = arith.addf %47, %50 : vector<16x1xf32>
    %52 = math.rsqrt %51 : vector<16x1xf32>
    %53 = vector.broadcast %52 : vector<16x1xf32> to vector<16x32xf32>
    %54 = arith.mulf %49, %53 : vector<16x32xf32>
    %55 = vector.broadcast %32 : vector<1x32xf32> to vector<16x32xf32>
    %56 = arith.mulf %54, %55 : vector<16x32xf32>
    %57 = vector.broadcast %33 : vector<1x32xf32> to vector<16x32xf32>
    %58 = arith.addf %56, %57 : vector<16x32xf32>
    %c0_26 = arith.constant 0 : index
    %c0_27 = arith.constant 0 : index
    %c0_28 = arith.constant 0 : index
    %59 = vector.load %arg4[%c0_26, %c0_27, %c0_28] : memref<2x32x32xf32, #tpu.memory_space<vmem>>, vector<1x32x32xf32>
    %60 = vector.shape_cast %59 : vector<1x32x32xf32> to vector<32x32xf32>
    %cst_29 = arith.constant dense<0.000000e+00> : vector<16x32xf32>
    %61 = tpu.matmul %58, %60, %cst_29 {dimension_numbers = #tpu.dot_dimension_numbers<[1], [0], [0], [1], [0, 0, 1, 1], [], []>} : vector<16x32xf32>, vector<32x32xf32>, vector<16x32xf32> -> vector<16x32xf32>
    %62 = vector.broadcast %30 : vector<1x32xf32> to vector<16x32xf32>
    %63 = arith.addf %61, %62 : vector<16x32xf32>
    %cst_30 = arith.constant 0.000000e+00 : f32
    %64 = vector.broadcast %cst_30 : f32 to vector<16x32xf32>
    %65 = arith.maximumf %63, %64 : vector<16x32xf32>
    %c1 = arith.constant 1 : index
    %c0_31 = arith.constant 0 : index
    %c0_32 = arith.constant 0 : index
    %66 = vector.load %arg4[%c1, %c0_31, %c0_32] : memref<2x32x32xf32, #tpu.memory_space<vmem>>, vector<1x32x32xf32>
    %67 = vector.shape_cast %66 : vector<1x32x32xf32> to vector<32x32xf32>
    %cst_33 = arith.constant dense<0.000000e+00> : vector<16x32xf32>
    %68 = tpu.matmul %65, %67, %cst_33 {dimension_numbers = #tpu.dot_dimension_numbers<[1], [0], [0], [1], [0, 0, 1, 1], [], []>} : vector<16x32xf32>, vector<32x32xf32>, vector<16x32xf32> -> vector<16x32xf32>
    %69 = vector.broadcast %31 : vector<1x32xf32> to vector<16x32xf32>
    %70 = arith.addf %68, %69 : vector<16x32xf32>
    %71 = arith.addf %58, %70 : vector<16x32xf32>
    %cst_34 = arith.constant dense<0.000000e+00> : vector<16xf32>
    %72 = vector.multi_reduction <add>, %71, %cst_34 [1] : vector<16x32xf32> to vector<16xf32>
    %73 = vector.shape_cast %72 : vector<16xf32> to vector<16x1xf32>
    %cst_35 = arith.constant 3.200000e+01 : f32
    %74 = vector.broadcast %cst_35 : f32 to vector<16x1xf32>
    %75 = arith.divf %73, %74 : vector<16x1xf32>
    %76 = vector.broadcast %75 : vector<16x1xf32> to vector<16x32xf32>
    %77 = arith.subf %71, %76 : vector<16x32xf32>
    %78 = arith.mulf %77, %77 : vector<16x32xf32>
    %cst_36 = arith.constant dense<0.000000e+00> : vector<16xf32>
    %79 = vector.multi_reduction <add>, %78, %cst_36 [1] : vector<16x32xf32> to vector<16xf32>
    %80 = vector.shape_cast %79 : vector<16xf32> to vector<16x1xf32>
    %cst_37 = arith.constant 3.200000e+01 : f32
    %81 = vector.broadcast %cst_37 : f32 to vector<16x1xf32>
    %82 = arith.divf %80, %81 : vector<16x1xf32>
    %83 = vector.broadcast %75 : vector<16x1xf32> to vector<16x32xf32>
    %84 = arith.subf %71, %83 : vector<16x32xf32>
    %cst_38 = arith.constant 9.99999997E-7 : f32
    %85 = vector.broadcast %cst_38 : f32 to vector<16x1xf32>
    %86 = arith.addf %82, %85 : vector<16x1xf32>
    %87 = math.rsqrt %86 : vector<16x1xf32>
    %88 = vector.broadcast %87 : vector<16x1xf32> to vector<16x32xf32>
    %89 = arith.mulf %84, %88 : vector<16x32xf32>
    %90 = vector.broadcast %34 : vector<1x32xf32> to vector<16x32xf32>
    %91 = arith.mulf %89, %90 : vector<16x32xf32>
    %92 = vector.broadcast %35 : vector<1x32xf32> to vector<16x32xf32>
    %93 = arith.addf %91, %92 : vector<16x32xf32>
    %c0_39 = arith.constant 0 : index
    %c0_40 = arith.constant 0 : index
    %94 = vector.load %arg6[%c0_39, %c0_40] : memref<16x32xf32, #tpu.memory_space<vmem>>, vector<16x32xf32>
    tpu.vector_store %arg6[%c0_39, %c0_40], %93 {strides = array<i32>} : memref<16x32xf32, #tpu.memory_space<vmem>>, vector<16x32xf32>,
    return
  }
}

</mosaic_0001>

<bundles_post_ra>
// kernel: sakt_layer.1
= control target key start
LH: loop header
LB: loop body
LE: loop exit
PB: predicated region body
PF: predicated region fallthrough
CT: control target
= control target key end

     0   :  { %vm99_vm0 = vcmask 261120   ;;  %s1718_s0 = inlined_call_operand.vmem [shape: f32[12,16,32], index: 0, kind: input, shape index: {}]   ;;  %s1719_s1 = inlined_call_operand.vmem [shape: f32[12,32,8], index: 1, kind: input, shape index: {}]   ;;  %s1720_s2 = inlined_call_operand.vmem [shape: f32[16,16], index: 2, kind: input, shape index: {}]   ;;  %s1721_s3 = inlined_call_operand.vmem [shape: f32[4,8,32], index: 3, kind: input, shape index: {}]   ;;  %s1722_s4 = inlined_call_operand.vmem [shape: f32[2,32,32], index: 4, kind: input, shape index: {}]   ;;  %s1723_s5 = inlined_call_operand.vmem [shape: f32[8,32], index: 5, kind: input, shape index: {}]   ;;  %s1724_s6 = inlined_call_operand.hbm [shape: f32[16,32], index: 6, kind: output, shape index: {}]  }
   0x1   :  { %v54_v0 = vld [vmem:[%s1719_s1 + $0x18] sm:$0xff]  ;;  %v53_v2 = vld [vmem:[%s1719_s1 + $0x10] sm:$0xff]  ;;  %v52_v4 = vld [vmem:[%s1719_s1 + $0x8] sm:$0xff] }
   0x2   :  { %v58_v1 = vld [vmem:[%s1719_s1 + $0x38] sm:$0xff]  ;;  %118 = vmatpush.msra.mxu0 %v54_v0  ;;  %1215 = vmatpush.msra.mxu2 %v54_v0  ;;  %v57_v3 = vld [vmem:[%s1719_s1 + $0x30] sm:$0xff]  ;;  %v56_v5 = vld [vmem:[%s1719_s1 + $0x28] sm:$0xff] }
   0x3   :  { %147 = vmatpush.msra.mxu1 %v58_v1  ;;  %1219 = vmatpush.msra.mxu3 %v58_v1  ;;  %v51_v6 = vld [vmem:[%s1719_s1] sm:$0xff]  ;;  %v28_v9 = vld [vmem:[%s1718_s0 + $0x8] sm:$0xff]  ;;  %v29_v10 = vld [vmem:[%s1718_s0 + $0x10] sm:$0xff] }
   0x4   :  { %119 = vmatpush.msra.mxu0 %v53_v2  ;;  %1216 = vmatpush.msra.mxu2 %v53_v2  ;;  %v55_v7 = vld [vmem:[%s1719_s1 + $0x20] sm:$0xff]  ;;  %v30_v11 = vld [vmem:[%s1718_s0 + $0x18] sm:$0xff]  ;;  %v61_v16 = vld [vmem:[%s1719_s1 + $0x50] sm:$0xff] }
   0x5   :  { %148 = vmatpush.msra.mxu1 %v57_v3  ;;  %1220 = vmatpush.msra.mxu3 %v57_v3  ;;  %v27_v8 = vld [vmem:[%s1718_s0] sm:$0xff]  ;;  %v62_v12 = vld [vmem:[%s1719_s1 + $0x58] sm:$0xff]  ;;  %v65_v17 = vld [vmem:[%s1719_s1 + $0x70] sm:$0xff] }
   0x6   :  { %120 = vmatpush.msra.mxu0 %v52_v4  ;;  %1217 = vmatpush.msra.mxu2 %v52_v4  ;;  %v66_v13 = vld [vmem:[%s1719_s1 + $0x78] sm:$0xff]  ;;  %v69_v18 = vld [vmem:[%s1719_s1 + $0x90] sm:$0xff]  ;;  %v60_v20 = vld [vmem:[%s1719_s1 + $0x48] sm:$0xff] }
   0x7   :  { %149 = vmatpush.msra.mxu1 %v56_v5  ;;  %1221 = vmatpush.msra.mxu3 %v56_v5  ;;  %v70_v14 = vld [vmem:[%s1719_s1 + $0x98] sm:$0xff]  ;;  %v73_v19 = vld [vmem:[%s1719_s1 + $0xb0] sm:$0xff]  ;;  %v64_v21 = vld [vmem:[%s1719_s1 + $0x68] sm:$0xff] }
   0x8   :  { %121 = vmatpush.msra.mxu0 %v51_v6  ;;  %1218 = vmatpush.msra.mxu2 %v51_v6  ;;  %v74_v15 = vld [vmem:[%s1719_s1 + $0xb8] sm:$0xff]  ;;  %v68_v22 = vld [vmem:[%s1719_s1 + $0x88] sm:$0xff]  ;;  %v59_v24 = vld [vmem:[%s1719_s1 + $0x40] sm:$0xff] }
   0x9   :  { %150 = vmatpush.msra.mxu1 %v55_v7  ;;  %1222 = vmatpush.msra.mxu3 %v55_v7  ;;  %v72_v23 = vld [vmem:[%s1719_s1 + $0xa8] sm:$0xff]  ;;  %v63_v25 = vld [vmem:[%s1719_s1 + $0x60] sm:$0xff]  ;;  %v33_v29 = vld [vmem:[%s1718_s0 + $0x30] sm:$0xff] }
   0xa   :  { %1151 = vmatmul.msk.f32.vlgmr.msra.gmra.mxu0 %vm99_vm0, %v27_v8  ;;  %1152 = vmatmul.msk.f32.vlgmr.msra.gmra.mxu2 %vm99_vm0, %v28_v9  ;;  %v67_v26 = vld [vmem:[%s1719_s1 + $0x80] sm:$0xff] }
   0xb   :  { %1153 = vmatmul.msk.f32.vlgmr.msra.gmra.mxu1 %vm99_vm0, %v29_v10  ;;  %1154 = vmatmul.msk.f32.vlgmr.msra.gmra.mxu3 %vm99_vm0, %v30_v11  ;;  %v71_v27 = vld [vmem:[%s1719_s1 + $0xa0] sm:$0xff] }
   0xc   :  { %176 = vmatpush.msrb.mxu2 %v62_v12  ;;  %205 = vmatpush.msrb.mxu3 %v66_v13  ;;  %v31_v28 = vld [vmem:[%s1718_s0 + $0x20] sm:$0xff] }
   0xd   :  { %234 = vmatpush.msrb.mxu0 %v70_v14  ;;  %263 = vmatpush.msrb.mxu1 %v74_v15 }
   0xe   :  { %177 = vmatpush.msrb.mxu2 %v61_v16  ;;  %206 = vmatpush.msrb.mxu3 %v65_v17 }
   0xf   :  { %235 = vmatpush.msrb.mxu0 %v69_v18  ;;  %264 = vmatpush.msrb.mxu1 %v73_v19 }
  0x10   :  { %178 = vmatpush.msrb.mxu2 %v60_v20  ;;  %207 = vmatpush.msrb.mxu3 %v64_v21 }
  0x11   :  { %236 = vmatpush.msrb.mxu0 %v68_v22  ;;  %265 = vmatpush.msrb.mxu1 %v72_v23 }
  0x12   :  { %11 = vsyncpa [#allocation3], 0  ;;  %179 = vmatpush.msrb.mxu2 %v59_v24  ;;  %208 = vmatpush.msrb.mxu3 %v63_v25  ;;  %v1431_v30 = vld [vmem:[%s1718_s0 + $0x40] sm:$0xff]  ;;  %v37_v31 = vld [vmem:[%s1718_s0 + $0x50] sm:$0xff]  ;;  %vm448_vm1 = vcmask 64512   ;;  %vm607_vm2 = vcmask 130048  }
  0x13   :  { %237 = vmatpush.msrb.mxu0 %v67_v26  ;;  %266 = vmatpush.msrb.mxu1 %v71_v27  ;;  %v78_v32 = vld [vmem:[%s1719_s1 + $0xd8] sm:$0xff]  ;;  %v77_v34 = vld [vmem:[%s1719_s1 + $0xd0] sm:$0xff]  ;;  %v76_v36 = vld [vmem:[%s1719_s1 + $0xc8] sm:$0xff]  ;;  %s1297_s23 = smov 128   ;;  %s1298_s24 = smov 8  }
  0x14   :  { %v82_v33 = vld [vmem:[%s1719_s1 + $0xf8] sm:$0xff]  ;;  %1155 = vmatmul.msk.f32.vlgmr.msrb.gmra.mxu2 %vm99_vm0, %v31_v28  ;;  %1157 = vmatmul.msk.f32.vlgmr.msrb.gmra.mxu3 %vm99_vm0, %v33_v29  ;;  %v81_v35 = vld [vmem:[%s1719_s1 + $0xf0] sm:$0xff]  ;;  %v80_v37 = vld [vmem:[%s1719_s1 + $0xe8] sm:$0xff] }
  0x15   :  { %1159 = vmatmul.msk.f32.vlgmr.msrb.gmra.mxu0 %vm99_vm0, %v1431_v30  ;;  %1161 = vmatmul.msk.f32.vlgmr.msrb.gmra.mxu1 %vm99_vm0, %v37_v31  ;;  %v32_v38 = vld [vmem:[%s1718_s0 + $0x28] sm:$0xff]  ;;  %v34_v39 = vld [vmem:[%s1718_s0 + $0x38] sm:$0xff]  ;;  %v75_v42 = vld [vmem:[%s1719_s1 + $0xc0] sm:$0xff] }
  0x16   :  { %292 = vmatpush.msra.mxu2 %v78_v32  ;;  %321 = vmatpush.msra.mxu3 %v82_v33  ;;  %v1468_v40 = vld [vmem:[%s1718_s0 + $0x48] sm:$0xff]  ;;  %v38_v41 = vld [vmem:[%s1718_s0 + $0x58] sm:$0xff]  ;;  %v79_v43 = vld [vmem:[%s1719_s1 + $0xe0] sm:$0xff] }
  0x17   :  { %v39_v44 = vld [vmem:[%s1718_s0 + $0x60] sm:$0xff]  ;;  %v41_v45 = vld [vmem:[%s1718_s0 + $0x70] sm:$0xff]  ;;  %v40_v46 = vld [vmem:[%s1718_s0 + $0x68] sm:$0xff] }
  0x18   :  { %293 = vmatpush.msra.mxu2 %v77_v34  ;;  %322 = vmatpush.msra.mxu3 %v81_v35  ;;  %v42_v47 = vld [vmem:[%s1718_s0 + $0x78] sm:$0xff]  ;;  %v85_v50 = vld [vmem:[%s1719_s1 + $0x110] sm:$0xff]  ;;  %v84_v52 = vld [vmem:[%s1719_s1 + $0x108] sm:$0xff] }
  0x19   :  { %v86_v48 = vld [vmem:[%s1719_s1 + $0x118] sm:$0xff]  ;;  %v89_v51 = vld [vmem:[%s1719_s1 + $0x130] sm:$0xff]  ;;  %v88_v53 = vld [vmem:[%s1719_s1 + $0x128] sm:$0xff] }
  0x1a   :  { %294 = vmatpush.msra.mxu2 %v76_v36  ;;  %323 = vmatpush.msra.mxu3 %v80_v37  ;;  %v90_v49 = vld [vmem:[%s1719_s1 + $0x138] sm:$0xff]  ;;  %v83_v54 = vld [vmem:[%s1719_s1 + $0x100] sm:$0xff]  ;;  %v45_v57 = vld [vmem:[%s1718_s0 + $0x90] sm:$0xff] }
  0x1b   :  { %350 = vmatpush.msra.mxu0 %v86_v48  ;;  %379 = vmatpush.msra.mxu1 %v90_v49  ;;  %v87_v55 = vld [vmem:[%s1719_s1 + $0x120] sm:$0xff]  ;;  %v94_v58 = vld [vmem:[%s1719_s1 + $0x158] sm:$0xff]  ;;  %v93_v59 = vld [vmem:[%s1719_s1 + $0x150] sm:$0xff] }
  0x1c   :  { %1156 = vmatmul.msk.f32.gmra.mxu2 %vm99_vm0, %v32_v38  ;;  %1158 = vmatmul.msk.f32.gmra.mxu3 %vm99_vm0, %v34_v39  ;;  %v43_v56 = vld [vmem:[%s1718_s0 + $0x80] sm:$0xff]  ;;  %v44_v60 = vld [vmem:[%s1718_s0 + $0x88] sm:$0xff]  ;;  %v46_v61 = vld [vmem:[%s1718_s0 + $0x98] sm:$0xff] }
  0x1d   :  { %1160 = vmatmul.msk.f32.gmra.mxu0 %vm99_vm0, %v1468_v40  ;;  %1162 = vmatmul.msk.f32.gmra.mxu1 %vm99_vm0, %v38_v41  ;;  %v92_v62 = vld [vmem:[%s1719_s1 + $0x148] sm:$0xff]  ;;  %v91_v63 = vld [vmem:[%s1719_s1 + $0x140] sm:$0xff]  ;;  %v98_v1 = vld [vmem:[%s1719_s1 + $0x178] sm:$0xff] }
  0x1e   :  { %295 = vmatpush.msra.mxu2 %v75_v42  ;;  %324 = vmatpush.msra.mxu3 %v79_v43  ;;  %v47_v0 = vld [vmem:[%s1718_s0 + $0xa0] sm:$0xff]  ;;  %v97_v2 = vld [vmem:[%s1719_s1 + $0x170] sm:$0xff]  ;;  %v96_v3 = vld [vmem:[%s1719_s1 + $0x168] sm:$0xff] }
  0x1f   :  { %351 = vmatpush.msra.mxu0 %v85_v50  ;;  %380 = vmatpush.msra.mxu1 %v89_v51  ;;  %v95_v4 = vld [vmem:[%s1719_s1 + $0x160] sm:$0xff]  ;;  %v49_v5 = vld [vmem:[%s1718_s0 + $0xb0] sm:$0xff]  ;;  %v48_v6 = vld [vmem:[%s1718_s0 + $0xa8] sm:$0xff] }
  0x20   :  { %408 = vmatpush.msrb.mxu2 %v94_v58  ;;  %437 = vmatpush.msrb.mxu3 %v98_v1  ;;  %v50_v10 = vld [vmem:[%s1718_s0 + $0xb8] sm:$0xff]  ;;  %v597_v34 = vld [vmem:[%s1720_s2] sm:$0xff] }
  0x21   :  { %352 = vmatpush.msra.mxu0 %v84_v52  ;;  %381 = vmatpush.msra.mxu1 %v88_v53  ;;  %v598_v52 = vld [vmem:[%s1720_s2 + $0x8] sm:$0xff]  ;;  %s1137_s2 = sshll.u32 %s1724_s6, 4  ;;  %s1138_s2 = int_to_ptr.hbm [resolvable:$true] %s1137_s2 }
  0x22   :  { %409 = vmatpush.msrb.mxu2 %v93_v59  ;;  %438 = vmatpush.msrb.mxu3 %v97_v2 }
  0x23   :  { %353 = vmatpush.msra.mxu0 %v83_v54  ;;  %382 = vmatpush.msra.mxu1 %v87_v55 }
  0x24   :  { %1163 = vmatmul.msk.f32.vlgmr.msra.gmra.mxu2 %vm99_vm0, %v39_v44  ;;  %1165 = vmatmul.msk.f32.vlgmr.msra.gmra.mxu3 %vm99_vm0, %v41_v45 }
  0x25   :  { %1167 = vmatmul.msk.f32.vlgmr.msra.gmra.mxu0 %vm99_vm0, %v43_v56  ;;  %1169 = vmatmul.msk.f32.vlgmr.msra.gmra.mxu1 %vm99_vm0, %v45_v57 }
  0x26   :  { %410 = vmatpush.msrb.mxu2 %v92_v62  ;;  %439 = vmatpush.msrb.mxu3 %v96_v3 }
  0x28   :  { %411 = vmatpush.msrb.mxu2 %v91_v63  ;;  %440 = vmatpush.msrb.mxu3 %v95_v4 }
  0x2c   :  { %1164 = vmatmul.msk.f32.gmra.mxu2 %vm99_vm0, %v40_v46  ;;  %1166 = vmatmul.msk.f32.gmra.mxu3 %vm99_vm0, %v42_v47 }
  0x2d   :  { %1168 = vmatmul.msk.f32.gmra.mxu0 %vm99_vm0, %v44_v60  ;;  %1170 = vmatmul.msk.f32.gmra.mxu1 %vm99_vm0, %v46_v61 }
  0x34   :  { %1171 = vmatmul.msk.f32.vlgmr.msrb.gmra.mxu2 %vm99_vm0, %v47_v0  ;;  %1173 = vmatmul.msk.f32.vlgmr.msrb.gmra.mxu3 %vm99_vm0, %v49_v5 }
  0x3c   :  { %1172 = vmatmul.msk.f32.gmra.mxu2 %vm99_vm0, %v48_v6  ;;  %1174 = vmatmul.msk.f32.gmra.mxu3 %vm99_vm0, %v50_v10 }
  0x87   :  { %v123_v7 = vpop.f32.mrf.mxu0 }
  0x88   :  { %v152_v8 = vpop.f32.mrf.mxu1 }
  0x8d   :  { %v126_v9 = vpop.f32.mrf.mxu2 }
  0x8e   :  { %v155_v11 = vpop.f32.mrf.mxu3 }
  0x92   :  { %v239_v12 = vpop.f32.mrf.mxu0  ;;  %v268_v13 = vpop.f32.mrf.mxu1 }
  0x97   :  { %v181_v14 = vpop.f32.mrf.mxu2  ;;  %v210_v15 = vpop.f32.mrf.mxu3 }
  0x9a   :  { %v242_v16 = vpop.f32.mrf.mxu0  ;;  %v271_v17 = vpop.f32.mrf.mxu1 }
  0x9b   :  { %1175 = vmatpush.xpose.msk.msrb.mxu0 %vm448_vm1, %v242_v16  ;;  %1179 = vmatpush.xpose.msk.msrb.mxu1 %vm448_vm1, %v271_v17 }
  0x9f   :  { %1176 = vmatpush.xpose.msk.msrb.mxu0 %vm448_vm1, %v239_v12  ;;  %1180 = vmatpush.xpose.msk.msrb.mxu1 %vm448_vm1, %v268_v13  ;;  %v184_v18 = vpop.f32.mrf.mxu2  ;;  %v213_v19 = vpop.f32.mrf.mxu3 }
  0xa2   :  { %1177 = vmatmul.msk.f32.vlgmr.msrb.gmra.mxu0 %vm448_vm1, %v123_v7  ;;  %1181 = vmatmul.msk.f32.vlgmr.msrb.gmra.mxu1 %vm448_vm1, %v152_v8  ;;  %v355_v24 = vpop.f32.mrf.mxu0  ;;  %v384_v25 = vpop.f32.mrf.mxu1 }
  0xa7   :  { %v297_v20 = vpop.f32.mrf.mxu2  ;;  %v326_v21 = vpop.f32.mrf.mxu3 }
  0xaa   :  { %1178 = vmatmul.msk.f32.gmra.mxu0 %vm448_vm1, %v126_v9  ;;  %1182 = vmatmul.msk.f32.gmra.mxu1 %vm448_vm1, %v155_v11  ;;  %v358_v26 = vpop.f32.mrf.mxu0  ;;  %v387_v27 = vpop.f32.mrf.mxu1 }
  0xab   :  { %745 = vmatpush.msra.mxu1 %v387_v27  ;;  %716 = vmatpush.msra.mxu0 %v358_v26 }
  0xad   :  { %746 = vmatpush.msra.mxu1 %v384_v25  ;;  %717 = vmatpush.msra.mxu0 %v355_v24 }
  0xaf   :  { %v300_v22 = vpop.f32.mrf.mxu2  ;;  %v329_v23 = vpop.f32.mrf.mxu3 }
  0xb0   :  { %1183 = vmatpush.xpose.msk.msra.mxu2 %vm448_vm1, %v300_v22  ;;  %1187 = vmatpush.xpose.msk.msra.mxu3 %vm448_vm1, %v329_v23 }
  0xb4   :  { %1184 = vmatpush.xpose.msk.msra.mxu2 %vm448_vm1, %v297_v20  ;;  %1188 = vmatpush.xpose.msk.msra.mxu3 %vm448_vm1, %v326_v21 }
  0xb7   :  { %1185 = vmatmul.msk.f32.vlgmr.msra.gmra.mxu2 %vm448_vm1, %v181_v14  ;;  %1189 = vmatmul.msk.f32.vlgmr.msra.gmra.mxu3 %vm448_vm1, %v210_v15  ;;  %v413_v28 = vpop.f32.mrf.mxu2  ;;  %v442_v29 = vpop.f32.mrf.mxu3 }
  0xbf   :  { %1186 = vmatmul.msk.f32.gmra.mxu2 %vm448_vm1, %v184_v18  ;;  %1190 = vmatmul.msk.f32.gmra.mxu3 %vm448_vm1, %v213_v19  ;;  %v416_v31 = vpop.f32.mrf.mxu2  ;;  %v445_v32 = vpop.f32.mrf.mxu3 }
  0xc0   :  { %774 = vmatpush.msrb.mxu2 %v416_v31  ;;  %803 = vmatpush.msrb.mxu3 %v445_v32 }
  0xc2   :  { %775 = vmatpush.msrb.mxu2 %v413_v28  ;;  %804 = vmatpush.msrb.mxu3 %v442_v29 }
 0x11f   :  { %v513_v33 = vpop.f32.mrf.mxu1  ;;  %v478_v38 = vpop.f32.mrf.mxu0 }
 0x120   :  { %v591_v35 = vmul.f32 0.35355338, %v513_v33  ;;  %v589_v59 = vmul.f32 0.35355338, %v478_v38 }
 0x122   :  { %v601_v36 = vadd.f32 %v597_v34, %v591_v35  ;;  %v599_v61 = vadd.f32 %v597_v34, %v589_v59 }
 0x124   :  { %v614_v37 = vsel %vm607_vm2, %v601_v36, -inf  ;;  %v608_v1 = vsel %vm607_vm2, %v599_v61, -inf }
 0x125   :  { %615 = vmax.xlane.f32.xlu2 %v614_v37 }
 0x127   :  { %v481_v51 = vpop.f32.mrf.mxu0  ;;  %v516_v62 = vpop.f32.mrf.mxu1 }
 0x128   :  { %v590_v55 = vmul.f32 0.35355338, %v481_v51  ;;  %v592_v0 = vmul.f32 0.35355338, %v516_v62 }
 0x12a   :  { %v600_v60 = vadd.f32 %v598_v52, %v590_v55  ;;  %v602_v2 = vadd.f32 %v598_v52, %v592_v0 }
 0x12c   :  { %v611_v63 = vsel %vm607_vm2, %v600_v60, -inf  ;;  %v617_v3 = vsel %vm607_vm2, %v602_v2, -inf }
 0x13a   :  { %v548_v39 = vpop.f32.mrf.mxu2  ;;  %v583_v41 = vpop.f32.mrf.mxu3 }
 0x13b   :  { %v593_v42 = vmul.f32 0.35355338, %v548_v39  ;;  %v595_v44 = vmul.f32 0.35355338, %v583_v41 }
 0x13d   :  { %v603_v43 = vadd.f32 %v597_v34, %v593_v42  ;;  %v605_v50 = vadd.f32 %v597_v34, %v595_v44 }
 0x13f   :  { %v620_v45 = vsel %vm607_vm2, %v603_v43, -inf  ;;  %v626_v57 = vsel %vm607_vm2, %v605_v50, -inf }
 0x140   :  { %621 = vmax.xlane.f32.xlu0 %v620_v45 }
 0x142   :  { %v551_v46 = vpop.f32.mrf.mxu2  ;;  %v586_v47 = vpop.f32.mrf.mxu3 }
 0x143   :  { %v594_v48 = vmul.f32 0.35355338, %v551_v46  ;;  %v596_v49 = vmul.f32 0.35355338, %v586_v47 }
 0x145   :  { %v606_v53 = vadd.f32 %v598_v52, %v596_v49  ;;  %v604_v54 = vadd.f32 %v598_v52, %v594_v48 }
 0x147   :  { %v629_v56 = vsel %vm607_vm2, %v606_v53, -inf  ;;  %v623_v58 = vsel %vm607_vm2, %v604_v54, -inf }
 0x148   :  { %630 = vmax.xlane.f32.xlu2 %v629_v56  ;;  %627 = vmax.xlane.f32.xlu0 %v626_v57 }
 0x149   :  { %624 = vmax.xlane.f32.xlu1 %v623_v58 }
 0x150   :  { %612 = vmax.xlane.f32.xlu0 %v611_v63 }
 0x151   :  { %609 = vmax.xlane.f32.xlu1 %v608_v1 }
 0x159   :  { %618 = vmax.xlane.f32.xlu1 %v617_v3 }
 0x198   :  { %v616_v6 = vpop.xlane.xlu2 %615 }
 0x199   :  { %v634_v15 = vsub.f32 %v601_v36, %v616_v6  ;;  %v814_v6 = vld [vmem:[%s1721_s3 + $0x10] sm:$0xff] }
 0x19a   :  { %895 = vmatpush.msra.mxu2 %v814_v6 }
 0x19b   :  { %v644_v19 = vmul.f32 1.442695, %v634_v15 }
 0x1b3   :  { %v622_v4 = vpop.xlane.xlu0 %621 }
 0x1b4   :  { %v636_v5 = vsub.f32 %v603_v43, %v622_v4 }
 0x1b6   :  { %v648_v7 = vmul.f32 1.442695, %v636_v5 }
 0x1b8   :  { %1227 = vpow2.f32 %v648_v7  ;;  %v815_v7 = vld [vmem:[%s1721_s3 + $0x18] sm:$0xff] }
 0x1b9   :  { %924 = vmatpush.msra.mxu3 %v815_v7 }
 0x1bb   :  { %v628_v8 = vpop.xlane.xlu0 %627  ;;  %v631_v11 = vpop.xlane.xlu2 %630 }
 0x1bc   :  { %v638_v9 = vsub.f32 %v605_v50, %v628_v8  ;;  %v625_v10 = vpop.xlane.xlu1 %624  ;;  %v639_v18 = vsub.f32 %v606_v53, %v631_v11  ;;  %v812_v8 = vld [vmem:[%s1721_s3] sm:$0xff] }
 0x1bd   :  { %v637_v12 = vsub.f32 %v604_v54, %v625_v10  ;;  %837 = vmatpush.msrb.mxu0 %v812_v8 }
 0x1be   :  { %v1228_v13 = vpop.eup %1227  ;;  %v652_v14 = vmul.f32 1.442695, %v638_v9  ;;  %v654_v20 = vmul.f32 1.442695, %v639_v18  ;;  %v813_v9 = vld [vmem:[%s1721_s3 + $0x8] sm:$0xff] }
 0x1bf   :  { %v650_v16 = vmul.f32 1.442695, %v637_v12  ;;  %v668_v17 = vsel %vm607_vm2, %v1228_v13, 0.0  ;;  %866 = vmatpush.msrb.mxu1 %v813_v9 }
 0x1c0   :  { %669 = vadd.xlane.f32.xlu2 %v668_v17  ;;  %1229 = vpow2.f32 %v652_v14 }
 0x1c1   :  { %1231 = vpow2.f32 %v650_v16 }
 0x1c2   :  { %1233 = vpow2.f32 %v644_v19 }
 0x1c3   :  { %v613_v22 = vpop.xlane.xlu0 %612  ;;  %1235 = vpow2.f32 %v654_v20 }
 0x1c4   :  { %v610_v21 = vpop.xlane.xlu1 %609  ;;  %v633_v26 = vsub.f32 %v600_v60, %v613_v22 }
 0x1c5   :  { %v632_v23 = vsub.f32 %v599_v61, %v610_v21 }
 0x1c6   :  { %v1230_v24 = vpop.eup %1229  ;;  %v642_v31 = vmul.f32 1.442695, %v633_v26 }
 0x1c7   :  { %v640_v25 = vmul.f32 1.442695, %v632_v23  ;;  %v1232_v27 = vpop.eup %1231  ;;  %v674_v28 = vsel %vm607_vm2, %v1230_v24, 0.0 }
 0x1c8   :  { %v671_v29 = vsel %vm607_vm2, %v1232_v27, 0.0  ;;  %675 = vadd.xlane.f32.xlu0 %v674_v28  ;;  %v1234_v33 = vpop.eup %1233 }
 0x1c9   :  { %1237 = vpow2.f32 %v640_v25  ;;  %672 = vadd.xlane.f32.xlu1 %v671_v29  ;;  %v1236_v35 = vpop.eup %1235  ;;  %v662_v39 = vsel %vm607_vm2, %v1234_v33, 0.0 }
 0x1ca   :  { %1239 = vpow2.f32 %v642_v31  ;;  %v677_v41 = vsel %vm607_vm2, %v1236_v35, 0.0 }
 0x1cc   :  { %v619_v32 = vpop.xlane.xlu1 %618 }
 0x1cd   :  { %v635_v34 = vsub.f32 %v602_v2, %v619_v32 }
 0x1cf   :  { %v1238_v36 = vpop.eup %1237  ;;  %v646_v37 = vmul.f32 1.442695, %v635_v34 }
 0x1d0   :  { %v656_v38 = vsel %vm607_vm2, %v1238_v36, 0.0  ;;  %663 = vadd.xlane.f32.xlu0 %v662_v39  ;;  %v1240_v42 = vpop.eup %1239 }
 0x1d1   :  { %1241 = vpow2.f32 %v646_v37  ;;  %657 = vadd.xlane.f32.xlu2 %v656_v38  ;;  %678 = vadd.xlane.f32.xlu1 %v677_v41  ;;  %v659_v45 = vsel %vm607_vm2, %v1240_v42, 0.0 }
 0x1d7   :  { %v1242_v43 = vpop.eup %1241 }
 0x1d8   :  { %v665_v44 = vsel %vm607_vm2, %v1242_v43, 0.0 }
 0x1d9   :  { %666 = vadd.xlane.f32.xlu0 %v665_v44  ;;  %660 = vadd.xlane.f32.xlu2 %v659_v45 }
 0x233   :  { %v670_v46 = vpop.xlane.xlu2 %669 }
 0x234   :  { %1243 = vrcp.f32 %v670_v46  ;;  %v1295_v46 = vmov 32.0  }
 0x23a   :  { %v1244_v47 = vpop.eup %1243 }
 0x23b   :  { %v692_v48 = vmul.f32 %v1244_v47, %v1228_v13  ;;  %v676_v49 = vpop.xlane.xlu0 %675 }
 0x23c   :  { %v673_v50 = vpop.xlane.xlu1 %672  ;;  %1245 = vrcp.f32 %v676_v49 }
 0x23d   :  { %1195 = vmatmul.msk.f32.vlgmr.msrb.gmra.mxu2 %vm607_vm2, %v692_v48  ;;  %1247 = vrcp.f32 %v673_v50 }
 0x242   :  { %v1246_v51 = vpop.eup %1245 }
 0x243   :  { %v1248_v52 = vpop.eup %1247  ;;  %v694_v53 = vmul.f32 %v1246_v51, %v1230_v24  ;;  %v664_v55 = vpop.xlane.xlu0 %663 }
 0x244   :  { %v658_v54 = vpop.xlane.xlu2 %657  ;;  %v679_v56 = vpop.xlane.xlu1 %678  ;;  %v693_v57 = vmul.f32 %v1248_v52, %v1232_v27 }
 0x245   :  { %1249 = vrcp.f32 %v658_v54  ;;  %1197 = vmatmul.msk.f32.vlgmr.msrb.gmra.mxu3 %vm607_vm2, %v694_v53 }
 0x246   :  { %1251 = vrcp.f32 %v679_v56  ;;  %1196 = vmatmul.msk.f32.gmra.mxu2 %vm607_vm2, %v693_v57 }
 0x247   :  { %1253 = vrcp.f32 %v664_v55 }
 0x24b   :  { %v1250_v58 = vpop.eup %1249 }
 0x24c   :  { %v1252_v59 = vpop.eup %1251  ;;  %v688_v60 = vmul.f32 %v1250_v58, %v1238_v36  ;;  %v661_v61 = vpop.xlane.xlu2 %660 }
 0x24d   :  { %v667_v62 = vpop.xlane.xlu0 %666  ;;  %v1254_v63 = vpop.eup %1253  ;;  %1255 = vrcp.f32 %v661_v61  ;;  %v695_v0 = vmul.f32 %v1252_v59, %v1236_v35  ;;  %v1009_v61 = vld [vmem:[%s1722_s4 + $0x18] sm:$0xff] }
 0x24e   :  { %v690_v1 = vmul.f32 %v1254_v63, %v1234_v33  ;;  %1257 = vrcp.f32 %v667_v62  ;;  %1191 = vmatmul.msk.f32.vlgmr.msra.gmra.mxu0 %vm607_vm2, %v688_v60  ;;  %v1008_v62 = vld [vmem:[%s1722_s4 + $0x10] sm:$0xff]  ;;  %v1007_v63 = vld [vmem:[%s1722_s4 + $0x8] sm:$0xff] }
 0x24f   :  { %1198 = vmatmul.msk.f32.gmra.mxu3 %vm607_vm2, %v695_v0  ;;  %1259 = vrcp.f32 %v1295_v46  ;;  %1029 = vmatpush.msra.mxu0 %v1009_v61  ;;  %v1006_v0 = vld [vmem:[%s1722_s4] sm:$0xff] }
 0x250   :  { %1193 = vmatmul.msk.f32.vlgmr.msra.gmra.mxu1 %vm607_vm2, %v690_v1 }
 0x251   :  { %1030 = vmatpush.msra.mxu0 %v1008_v62 }
 0x253   :  { %v1256_v2 = vpop.eup %1255  ;;  %1031 = vmatpush.msra.mxu0 %v1007_v63 }
 0x254   :  { %v1258_v3 = vpop.eup %1257  ;;  %v689_v4 = vmul.f32 %v1256_v2, %v1240_v42 }
 0x255   :  { %v691_v5 = vmul.f32 %v1258_v3, %v1242_v43  ;;  %1032 = vmatpush.msra.mxu0 %v1006_v0 }
 0x256   :  { %1192 = vmatmul.msk.f32.gmra.mxu0 %vm607_vm2, %v689_v4  ;;  %v1212_v4 = vld [vmem:[%s1722_s4 + $0x38] sm:$0xff] }
 0x257   :  { %1066 = vmatpush.msra.mxu1 %v1212_v4 }
 0x258   :  { %1194 = vmatmul.msk.f32.gmra.mxu1 %vm607_vm2, %v691_v5 }
 0x2c0   :  { %v777_v10 = vpop.f32.mrf.mxu2 }
 0x2c1   :  { %1203 = vmatmul.msk.f32.vlgmr.msra.gmra.mxu2 %vm448_vm1, %v777_v10 }
 0x2c8   :  { %v806_v11 = vpop.f32.mrf.mxu3 }
 0x2c9   :  { %v780_v12 = vpop.f32.mrf.mxu2  ;;  %1205 = vmatmul.msk.f32.vlgmr.msra.gmra.mxu3 %vm448_vm1, %v806_v11 }
 0x2ca   :  { %1204 = vmatmul.msk.f32.gmra.mxu2 %vm448_vm1, %v780_v12  ;;  %v1684_v12 = vld [vmem:[%s1723_s5] sm:$0xff] }
 0x2cb   :  { %v719_v13 = vpop.f32.mrf.mxu0 }
 0x2cc   :  { %1199 = vmatmul.msk.f32.vlgmr.msrb.gmra.mxu0 %vm448_vm1, %v719_v13 }
 0x2cd   :  { %v748_v14 = vpop.f32.mrf.mxu1 }
 0x2ce   :  { %1201 = vmatmul.msk.f32.vlgmr.msrb.gmra.mxu1 %vm448_vm1, %v748_v14 }
 0x2d2   :  { %v809_v15 = vpop.f32.mrf.mxu3 }
 0x2d3   :  { %1206 = vmatmul.msk.f32.gmra.mxu3 %vm448_vm1, %v809_v15  ;;  %v722_v16 = vpop.f32.mrf.mxu0 }
 0x2d4   :  { %1200 = vmatmul.msk.f32.gmra.mxu0 %vm448_vm1, %v722_v16 }
 0x2d5   :  { %v751_v17 = vpop.f32.mrf.mxu1 }
 0x2d6   :  { %1202 = vmatmul.msk.f32.gmra.mxu1 %vm448_vm1, %v751_v17  ;;  %v1000_v17 = vperm.slane %v1684_v12, 2 }
 0x344   :  { %v897_v18 = vpop.f32.mrf.mxu2 }
 0x345   :  { %v935_v25 = vsel %vm99_vm0, %v897_v18, 0.0 }
 0x349   :  { %v839_v19 = vpop.f32.mrf.mxu0 }
 0x34a   :  { %v932_v20 = vsel %vm99_vm0, %v839_v19, 0.0 }
 0x34b   :  { %v868_v21 = vpop.f32.mrf.mxu1 }
 0x34c   :  { %v933_v22 = vsel %vm99_vm0, %v868_v21, 0.0  ;;  %v926_v24 = vpop.f32.mrf.mxu3  ;;  %v1003_v21 = vperm.slane %v1684_v12, 3 }
 0x34d   :  { %v934_v23 = vadd.f32 %v933_v22, %v932_v20  ;;  %v937_v26 = vsel %vm99_vm0, %v926_v24, 0.0  ;;  %v900_v32 = vpop.f32.mrf.mxu2 }
 0x34e   :  { %v942_v38 = vsel %vm99_vm0, %v900_v32, 0.0  ;;  %v1211_v32 = vld [vmem:[%s1722_s4 + $0x30] sm:$0xff] }
 0x34f   :  { %v936_v27 = vadd.f32 %v935_v25, %v934_v23  ;;  %1067 = vmatpush.msra.mxu1 %v1211_v32 }
 0x351   :  { %v938_v28 = vadd.f32 %v937_v26, %v936_v27  ;;  %v842_v29 = vpop.f32.mrf.mxu0 }
 0x352   :  { %v939_v31 = vsel %vm99_vm0, %v842_v29, 0.0 }
 0x353   :  { %v871_v33 = vpop.f32.mrf.mxu1  ;;  %v947_v34 = vadd.f32 %v938_v28, %v1431_v30  ;;  %v1260_v30 = vpop.eup %1259 }
 0x354   :  { %v940_v35 = vsel %vm99_vm0, %v871_v33, 0.0  ;;  %v956_v47 = vmul.f32 32.0, %v1260_v30  ;;  %vm960_vm3 = vweird.f32 %v1260_v30  ;;  %v1210_v33 = vld [vmem:[%s1722_s4 + $0x28] sm:$0xff] }
 0x355   :  { %v941_v36 = vadd.f32 %v940_v35, %v939_v31  ;;  %v949_v37 = vsel %vm99_vm0, %v947_v34, 0.0  ;;  %1068 = vmatpush.msra.mxu1 %v1210_v33  ;;  %v1010_v35 = vperm.slane %v1684_v12, 0 }
 0x356   :  { %950 = vadd.xlane.f32.xlu1 %v949_v37  ;;  %v929_v39 = vpop.f32.mrf.mxu3  ;;  %v957_v48 = vsub.f32 1.0, %v956_v47 }
 0x357   :  { %v943_v41 = vadd.f32 %v942_v38, %v941_v36  ;;  %v944_v42 = vsel %vm99_vm0, %v929_v39, 0.0 }
 0x358   :  { %v958_v49 = vmul.f32 %v1260_v30, %v957_v48 }
 0x359   :  { %v945_v43 = vadd.f32 %v944_v42, %v943_v41 }
 0x35a   :  { %v959_v50 = vadd.f32 %v1260_v30, %v958_v49 }
 0x35b   :  { %v948_v44 = vadd.f32 %v945_v43, %v1468_v40  ;;  %v1047_v43 = vperm.slane %v1684_v12, 1 }
 0x35c   :  { %v1658_v51 = vsel %vm960_vm3, %v1260_v30, %v959_v50 }
 0x35d   :  { %v952_v45 = vsel %vm99_vm0, %v948_v44, 0.0 }
 0x35e   :  { %953 = vadd.xlane.f32.xlu2 %v952_v45 }
 0x3c9   :  { %v951_v52 = vpop.xlane.xlu1 %950 }
 0x3ca   :  { %v962_v53 = vmul.f32 %v1658_v51, %v951_v52 }
 0x3cc   :  { %v964_v54 = vsub.f32 %v947_v34, %v962_v53  ;;  %v1209_v34 = vld [vmem:[%s1722_s4 + $0x20] sm:$0xff]  ;;  %s1296_s4 = smov [#allocation2]  }
 0x3cd   :  { %1069 = vmatpush.msra.mxu1 %v1209_v34  ;;  %s1135_s1 = sshll.u32 %s1296_s4, 4  ;;  %s1136_s1 = int_to_ptr.vmem [resolvable:$true] %s1135_s1 }
 0x3ce   :  { %v966_v55 = vmul.f32 %v964_v54, %v964_v54 }
 0x3d0   :  { %v968_v40 = vsel %vm99_vm0, %v966_v55, 0.0 }
 0x3d1   :  { %v954_v56 = vpop.xlane.xlu2 %953  ;;  %969 = vadd.xlane.f32.xlu0 %v968_v40 }
 0x3d2   :  { %v963_v57 = vmul.f32 %v1658_v51, %v954_v56 }
 0x3d4   :  { %v965_v58 = vsub.f32 %v948_v44, %v963_v57 }
 0x3d6   :  { %v967_v59 = vmul.f32 %v965_v58, %v965_v58 }
 0x3d8   :  { %v971_v60 = vsel %vm99_vm0, %v967_v59, 0.0 }
 0x3d9   :  { %972 = vadd.xlane.f32.xlu1 %v971_v60 }
 0x444   :  { %v970_v1 = vpop.xlane.xlu0 %969 }
 0x445   :  { %v974_v2 = vmul.f32 %v970_v1, %v1658_v51 }
 0x447   :  { %v976_v3 = vadd.f32 1e-06, %v974_v2 }
 0x449   :  { %1261 = vrsqrt.f32 %v976_v3  ;;  %vm984_vm5 = vweird.f32 %v976_v3 }
 0x44c   :  { %v973_v5 = vpop.xlane.xlu1 %972 }
 0x44d   :  { %v975_v6 = vmul.f32 %v973_v5, %v1658_v51 }
 0x44f   :  { %v1262_v7 = vpop.eup %1261  ;;  %v977_v8 = vadd.f32 1e-06, %v975_v6 }
 0x450   :  { %v979_v9 = vmul.f32 %v1262_v7, %v976_v3  ;;  %vm985_vm4 = vweird.f32 %v1262_v7 }
 0x451   :  { %1263 = vrsqrt.f32 %v977_v8  ;;  %vm986_vm6 = vmor %vm984_vm5, %vm985_vm4  ;;  %vm994_vm8 = vweird.f32 %v977_v8 }
 0x452   :  { %v980_v10 = vmul.f32 %v1262_v7, %v979_v9 }
 0x454   :  { %v981_v11 = vmul.f32 0.5, %v980_v10 }
 0x456   :  { %v982_v13 = vsub.f32 1.5, %v981_v11  ;;  %v1123_v11 = vperm.slane %v1684_v12, 4 }
 0x457   :  { %v1264_v14 = vpop.eup %1263 }
 0x458   :  { %v983_v15 = vmul.f32 %v1262_v7, %v982_v13  ;;  %v989_v16 = vmul.f32 %v1264_v14, %v977_v8  ;;  %vm995_vm7 = vweird.f32 %v1264_v14 }
 0x459   :  { %vm996_vm9 = vmor %vm994_vm8, %vm995_vm7 }
 0x45a   :  { %v987_v18 = vsel %vm986_vm6, %v1262_v7, %v983_v15  ;;  %v990_v19 = vmul.f32 %v1264_v14, %v989_v16 }
 0x45b   :  { %v998_v20 = vmul.f32 %v987_v18, %v964_v54 }
 0x45c   :  { %v991_v22 = vmul.f32 0.5, %v990_v19 }
 0x45d   :  { %v1001_v23 = vmul.f32 %v1000_v17, %v998_v20 }
 0x45e   :  { %v992_v24 = vsub.f32 1.5, %v991_v22 }
 0x45f   :  { %v1004_v25 = vadd.f32 %v1003_v21, %v1001_v23 }
 0x460   :  { %v993_v26 = vmul.f32 %v1264_v14, %v992_v24 }
 0x461   :  { %1207 = vmatmul.msk.f32.vlgmr.msra.gmra.mxu0 %vm99_vm0, %v1004_v25 }
 0x462   :  { %v997_v27 = vsel %vm996_vm9, %v1264_v14, %v993_v26 }
 0x463   :  { %v999_v28 = vmul.f32 %v997_v27, %v965_v58 }
 0x465   :  { %v1002_v29 = vmul.f32 %v1000_v17, %v999_v28 }
 0x467   :  { %v1005_v31 = vadd.f32 %v1003_v21, %v1002_v29 }
 0x469   :  { %1208 = vmatmul.msk.f32.gmra.mxu0 %vm99_vm0, %v1005_v31 }
 0x4de   :  { %v1034_v36 = vpop.f32.mrf.mxu0 }
 0x4df   :  { %v1035_v37 = vadd.f32 %v1034_v36, %v1010_v35 }
 0x4e1   :  { %v1040_v38 = vmax.f32 %v1035_v37, 0.0 }
 0x4e3   :  { %1213 = vmatmul.msk.f32.vlgmr.msra.gmra.mxu1 %vm99_vm0, %v1040_v38 }
 0x4e6   :  { %v1037_v39 = vpop.f32.mrf.mxu0 }
 0x4e7   :  { %v1038_v41 = vadd.f32 %v1037_v39, %v1010_v35 }
 0x4e9   :  { %v1041_v42 = vmax.f32 %v1038_v41, 0.0 }
 0x4eb   :  { %1214 = vmatmul.msk.f32.gmra.mxu1 %vm99_vm0, %v1041_v42 }
 0x560   :  { %v1071_v44 = vpop.f32.mrf.mxu1 }
 0x561   :  { %v1072_v45 = vadd.f32 %v1071_v44, %v1047_v43 }
 0x563   :  { %v1077_v46 = vadd.f32 %v1072_v45, %v1004_v25 }
 0x565   :  { %v1079_v30 = vsel %vm99_vm0, %v1077_v46, 0.0 }
 0x566   :  { %1080 = vadd.xlane.f32.xlu2 %v1079_v30 }
 0x568   :  { %v1074_v47 = vpop.f32.mrf.mxu1 }
 0x569   :  { %v1075_v48 = vadd.f32 %v1074_v47, %v1047_v43 }
 0x56b   :  { %v1078_v49 = vadd.f32 %v1075_v48, %v1005_v31 }
 0x56d   :  { %v1082_v50 = vsel %vm99_vm0, %v1078_v49, 0.0 }
 0x56e   :  { %1083 = vadd.xlane.f32.xlu0 %v1082_v50 }
 0x5d9   :  { %v1081_v52 = vpop.xlane.xlu2 %1080 }
 0x5da   :  { %v1085_v53 = vmul.f32 %v1081_v52, %v1658_v51 }
 0x5dc   :  { %v1087_v54 = vsub.f32 %v1077_v46, %v1085_v53 }
 0x5de   :  { %v1089_v55 = vmul.f32 %v1087_v54, %v1087_v54 }
 0x5e0   :  { %v1091_v40 = vsel %vm99_vm0, %v1089_v55, 0.0 }
 0x5e1   :  { %1092 = vadd.xlane.f32.xlu1 %v1091_v40  ;;  %v1084_v56 = vpop.xlane.xlu0 %1083 }
 0x5e2   :  { %v1086_v57 = vmul.f32 %v1084_v56, %v1658_v51 }
 0x5e4   :  { %v1088_v58 = vsub.f32 %v1078_v49, %v1086_v57 }
 0x5e6   :  { %v1090_v59 = vmul.f32 %v1088_v58, %v1088_v58 }
 0x5e8   :  { %v1094_v60 = vsel %vm99_vm0, %v1090_v59, 0.0 }
 0x5e9   :  { %1095 = vadd.xlane.f32.xlu2 %v1094_v60 }
 0x654   :  { %v1093_v61 = vpop.xlane.xlu1 %1092 }
 0x655   :  { %v1097_v62 = vmul.f32 %v1093_v61, %v1658_v51 }
 0x657   :  { %v1099_v63 = vadd.f32 1e-06, %v1097_v62 }
 0x659   :  { %1265 = vrsqrt.f32 %v1099_v63  ;;  %vm1107_vm11 = vweird.f32 %v1099_v63 }
 0x65c   :  { %v1096_v0 = vpop.xlane.xlu2 %1095 }
 0x65d   :  { %v1098_v1 = vmul.f32 %v1096_v0, %v1658_v51  ;;  %v1126_v51 = vperm.slane %v1684_v12, 5 }
 0x65f   :  { %v1266_v2 = vpop.eup %1265  ;;  %v1100_v3 = vadd.f32 1e-06, %v1098_v1 }
 0x660   :  { %v1102_v4 = vmul.f32 %v1266_v2, %v1099_v63  ;;  %vm1108_vm10 = vweird.f32 %v1266_v2 }
 0x661   :  { %1267 = vrsqrt.f32 %v1100_v3  ;;  %vm1109_vm12 = vmor %vm1107_vm11, %vm1108_vm10  ;;  %vm1117_vm14 = vweird.f32 %v1100_v3 }
 0x662   :  { %v1103_v5 = vmul.f32 %v1266_v2, %v1102_v4 }
 0x664   :  { %v1104_v6 = vmul.f32 0.5, %v1103_v5 }
 0x666   :  { %v1105_v7 = vsub.f32 1.5, %v1104_v6 }
 0x667   :  { %v1268_v8 = vpop.eup %1267 }
 0x668   :  { %v1106_v9 = vmul.f32 %v1266_v2, %v1105_v7  ;;  %v1112_v10 = vmul.f32 %v1268_v8, %v1100_v3  ;;  %vm1118_vm13 = vweird.f32 %v1268_v8 }
 0x669   :  { %vm1119_vm15 = vmor %vm1117_vm14, %vm1118_vm13 }
 0x66a   :  { %v1110_v13 = vsel %vm1109_vm12, %v1266_v2, %v1106_v9  ;;  %v1113_v14 = vmul.f32 %v1268_v8, %v1112_v10 }
 0x66b   :  { %v1121_v15 = vmul.f32 %v1110_v13, %v1087_v54 }
 0x66c   :  { %v1114_v16 = vmul.f32 0.5, %v1113_v14 }
 0x66d   :  { %v1124_v17 = vmul.f32 %v1123_v11, %v1121_v15 }
 0x66e   :  { %v1115_v18 = vsub.f32 1.5, %v1114_v16 }
 0x66f   :  { %v1127_v19 = vadd.f32 %v1126_v51, %v1124_v17 }
 0x670   :  { %v1116_v20 = vmul.f32 %v1268_v8, %v1115_v18 }
 0x671   :  { %1129 = vst.msk [vmem:[#allocation2] sm:$0xff] %vm99_vm0, %v1127_v19 }
 0x672   :  { %v1120_v21 = vsel %vm1119_vm15, %v1268_v8, %v1116_v20 }
 0x673   :  { %v1122_v22 = vmul.f32 %v1120_v21, %v1088_v58 }
 0x675   :  { %v1125_v23 = vmul.f32 %v1123_v11, %v1122_v22 }
 0x677   :  { %v1128_v12 = vadd.f32 %v1126_v51, %v1125_v23 }
 0x679   :  { %1130 = vst.msk [vmem:[#allocation2 + $0x8] sm:$0xff] %vm99_vm0, %v1128_v12 }
 0x67a   :  { %1143 = dma.vmem_to_hbm [thread:$0]  %s1136_s1, 256, %s1138_s2, [#allocation3], %s1297_s23, %s1297_s23, %s1298_s24  }
 0x67b   :  { %1293 = dma.done.wait [#allocation3], 256  }
 0x67c   :  { %1294 = vsyncadd [#allocation3], 4294967040 }
 0x67d   :  { %1148 = vsyncpa [#allocation3], 1 }

</bundles_post_ra>
